<compile_context>
chip_gen: v7x
topology: tpu7x:2x2x1
jax: 0.10.0
libtpu: 0.0.40
codegen_flags: <defaults>
</compile_context>

<pallas_src>
import functools

import jax
import jax.numpy as jnp
import numpy as np
from jax.experimental import pallas as pl
from jax.experimental.pallas import tpu as pltpu

_LANE = 128
_TILE_BUDGET_BYTES = 8 << 20   # budget for the double-buffered x (+ out) stream
_MAX_TILE_ROWS = 32768


# --------------------------------------------------------------------------- #
# Kernels
# --------------------------------------------------------------------------- #
def _mlp_lane_kernel(x_ref, w1t_ref, b1_ref, w2_ref, b2_ref, o_ref, *, scale):
    # x:(TB,F) w1t:(F,H) b1:(1,H) w2:(1,H) b2:(1,1) o:(1,1,TB)
    h = jnp.dot(x_ref[...], w1t_ref[...], preferred_element_type=jnp.float32)
    h = jnp.maximum(h + b1_ref[...], 0.0)
    # n_outputs == 1: fc2 is a VPU multiply + lane-reduce; one XLU relayout
    # (TB,1)->(1,TB) makes the store full-lane instead of 1-of-128 masked.
    y = jnp.sum(h * w2_ref[...], axis=-1, keepdims=True)        # (TB, 1)
    yt = jnp.transpose(y)                                        # (1, TB)
    o_ref[0] = (scale * (yt + b2_ref[...])).astype(o_ref.dtype)


def _mlp_kernel(x_ref, w1t_ref, b1_ref, w2t_ref, b2_ref, o_ref, *, scale):
    # Generic layout: x:(TB,F) w1t:(F,H) b1:(1,H) w2t:(H,O) b2:(1,O) o:(TB,O)
    h = jnp.dot(x_ref[...], w1t_ref[...], preferred_element_type=jnp.float32)
    h = jnp.maximum(h + b1_ref[...], 0.0)
    y = jnp.dot(h, w2t_ref[...], preferred_element_type=jnp.float32)
    o_ref[...] = (scale * (y + b2_ref[...])).astype(o_ref.dtype)


def _linear_lane_kernel(x_ref, w_ref, b_ref, o_ref, *, scale):
    # hidden_size is None, n_outputs == 1: x:(TB,F) w:(1,F) b:(1,1) o:(1,1,TB)
    y = jnp.sum(x_ref[...].astype(jnp.float32) * w_ref[...],
                axis=-1, keepdims=True)                          # (TB, 1)
    yt = jnp.transpose(y)                                        # (1, TB)
    o_ref[0] = (scale * (yt + b_ref[...])).astype(o_ref.dtype)


def _linear_kernel(x_ref, wt_ref, b_ref, o_ref, *, scale):
    # hidden_size is None, generic layout: x:(TB,F) wt:(F,O) b:(1,O) o:(TB,O)
    y = jnp.dot(x_ref[...], wt_ref[...], preferred_element_type=jnp.float32)
    o_ref[...] = (scale * (y + b_ref[...])).astype(o_ref.dtype)


# --------------------------------------------------------------------------- #
# Tiling
# --------------------------------------------------------------------------- #
def _pick_batch_tile(B, bytes_per_row, max_batch_tile=None):
    """Rows per grid step: a multiple of 128 when tiling, else the full batch."""
    if max_batch_tile is not None:
        cap = max(_LANE, (int(max_batch_tile) // _LANE) * _LANE)
    else:
        cap = _TILE_BUDGET_BYTES // max(int(bytes_per_row), 1)
        cap = max(_LANE, min(_MAX_TILE_ROWS, (cap // _LANE) * _LANE))
    if B > cap:
        return cap                     # big batch: largest lane-multiple tile in budget
    if B > 2048:
        # Fits in one tile, but split in two so v7x's 2nd TensorCore gets work
        # (near-free on v5e/v6e and enables DMA/compute overlap).
        half = -(-B // 2)
        return -(-half // _LANE) * _LANE
    return B                           # small batch: one full-array block (always legal)


# --------------------------------------------------------------------------- #
# Wrapper
# --------------------------------------------------------------------------- #
def fitness_energy_model_forward(x, params, output_scaling=1.0, *,
                                 max_batch_tile=None):
    """Forward pass of FitnessEnergyModel.

    params uses exact torch.nn.Linear shapes (no pre-transposition required):
      'w1' (out, in), 'b1' (out,), and for hidden_size != None also
      'w2' (n_outputs, hidden), 'b2' (n_outputs,).
    x may be float32 or bfloat16; accumulation is always float32.
    """
    B, F = x.shape
    has_hidden = "w2" in params
    O = int((params["w2"] if has_hidden else params["w1"]).shape[0])
    scale = float(output_scaling)
    itemsize = x.dtype.itemsize

    bytes_per_row = 2 * (F + max(O, 1)) * itemsize      # double-buffered in + out
    TB = _pick_batch_tile(B, bytes_per_row, max_batch_tile)
    num_tiles = int(pl.cdiv(B, TB))
    Bp = num_tiles * TB
    # Padded ragged last tile keeps every block read/write in bounds.
    x_in = x if Bp == B else jnp.pad(x, ((0, Bp - B), (0, 0)))
    lane_dense = (O == 1) and (TB % _LANE == 0)

    w_bytes = sum(int(np.prod(v.shape)) * v.dtype.itemsize for v in params.values())
    needed = 2 * (TB * F + TB * (1 if lane_dense else O)) * itemsize + 2 * w_bytes
    vmem_limit = int(min(max(2 * needed, 16 << 20), 48 << 20))
    cparams = pltpu.CompilerParams(dimension_semantics=("parallel",),
                                   vmem_limit_bytes=vmem_limit)

    x_spec = pl.BlockSpec((TB, F), lambda i: (i, 0))
    const = lambda shape: pl.BlockSpec(shape, lambda i: (0,) * len(shape))

    if has_hidden:
        H = int(params["w1"].shape[0])
        w1t = jnp.transpose(params["w1"])               # (F, H): tiny, one-time
        b1 = params["b1"].reshape(1, H)
        b2 = params["b2"].reshape(1, O)
        flops = 2 * B * F * H + 2 * B * H * O + 3 * B * H
        ce = pl.CostEstimate(flops=flops, transcendentals=0,
                             bytes_accessed=itemsize * B * (F + O) + w_bytes)

        def run_lane():
            w2row = params["w2"].reshape(1, H)
            y = pl.pallas_call(
                functools.partial(_mlp_lane_kernel, scale=scale),
                out_shape=jax.ShapeDtypeStruct((num_tiles, 1, TB), x.dtype),
                grid=(num_tiles,),
                in_specs=[x_spec, const((F, H)), const((1, H)),
                          const((1, H)), const((1, 1))],
                out_specs=pl.BlockSpec((1, 1, TB), lambda i: (i, 0, 0)),
                compiler_params=cparams, cost_estimate=ce,
            )(x_in, w1t, b1, w2row, b2)
            return y.reshape(Bp)[:B].reshape(B, 1)

        def run_generic():
            w2t = jnp.transpose(params["w2"])           # (H, O)
            y = pl.pallas_call(
                functools.partial(_mlp_kernel, scale=scale),
                out_shape=jax.ShapeDtypeStruct((Bp, O), x.dtype),
                grid=(num_tiles,),
                in_specs=[x_spec, const((F, H)), const((1, H)),
                          const((H, O)), const((1, O))],
                out_specs=pl.BlockSpec((TB, O), lambda i: (i, 0)),
                compiler_params=cparams, cost_estimate=ce,
            )(x_in, w1t, b1, w2t, b2)
            return y[:B]

        if lane_dense:
            try:
                return run_lane()
            except Exception:   # pragma: no cover
                # TODO(synk): conservative fallback if the (TB,1)->(1,TB)
                # relayout fails to lower on some TPU generation.
                pass
        return run_generic()

    # hidden_size is None: single Linear -> scale -> Identity.
    b1 = params["b1"].reshape(1, O)
    flops = 2 * B * F * O + 2 * B * O
    ce = pl.CostEstimate(flops=flops, transcendentals=0,
                         bytes_accessed=itemsize * B * (F + O) + w_bytes)

    def run_lane_lin():
        wrow = params["w1"].reshape(1, F)
        y = pl.pallas_call(
            functools.partial(_linear_lane_kernel, scale=scale),
            out_shape=jax.ShapeDtypeStruct((num_tiles, 1, TB), x.dtype),
            grid=(num_tiles,),
            in_specs=[x_spec, const((1, F)), const((1, 1))],
            out_specs=pl.BlockSpec((1, 1, TB), lambda i: (i, 0, 0)),
            compiler_params=cparams, cost_estimate=ce,
        )(x_in, wrow, b1)
        return y.reshape(Bp)[:B].reshape(B, 1)

    def run_generic_lin():
        wt = jnp.transpose(params["w1"])                # (F, O)
        y = pl.pallas_call(
            functools.partial(_linear_kernel, scale=scale),
            out_shape=jax.ShapeDtypeStruct((Bp, O), x.dtype),
            grid=(num_tiles,),
            in_specs=[x_spec, const((F, O)), const((1, O))],
            out_specs=pl.BlockSpec((TB, O), lambda i: (i, 0)),
            compiler_params=cparams, cost_estimate=ce,
        )(x_in, wt, b1)
        return y[:B]

    if lane_dense:
        try:
            return run_lane_lin()
        except Exception:       # pragma: no cover
            pass
    return run_generic_lin()


# --------------------------------------------------------------------------- #
# PyTorch-style parameter init (torch.nn.Linear default: U(-1/sqrt(fan_in), .))
# --------------------------------------------------------------------------- #
def init_params(key, n_features, hidden_size, n_outputs):
    params = {}
    if hidden_size is not None:
        k1, k2, k3, k4 = jax.random.split(key, 4)
        bound1 = 1.0 / np.sqrt(n_features)
        params["w1"] = jax.random.uniform(k1, (hidden_size, n_features),
                                          jnp.float32, -bound1, bound1)
        params["b1"] = jax.random.uniform(k2, (hidden_size,), jnp.float32,
                                          -bound1, bound1)
        bound2 = 1.0 / np.sqrt(hidden_size)
        params["w2"] = jax.random.uniform(k3, (n_outputs, hidden_size),
                                          jnp.float32, -bound2, bound2)
        params["b2"] = jax.random.uniform(k4, (n_outputs,), jnp.float32,
                                          -bound2, bound2)
    else:
        k1, k2 = jax.random.split(key, 2)
        bound1 = 1.0 / np.sqrt(n_features)
        params["w1"] = jax.random.uniform(k1, (n_outputs, n_features),
                                          jnp.float32, -bound1, bound1)
        params["b1"] = jax.random.uniform(k2, (n_outputs,), jnp.float32,
                                          -bound1, bound1)
    return params


# --------------------------------------------------------------------------- #
# Self-test
# --------------------------------------------------------------------------- #
if __name__ == "__main__":
    output_scaling = 2.5
    n_features, hidden_size = 16, 32
    key = jax.random.PRNGKey(0)
    kx, kp = jax.random.split(key)

    def snap_bf16(a):
        # Round test data to the bf16 grid so the fc1 MXU matmul is exact
        # regardless of how many bf16 passes the compiler chooses for f32.
        return a.astype(jnp.bfloat16).astype(jnp.float32)

    def ref_forward(x, p, scale):  # exact float64 host reference
        xn = np.asarray(x, np.float64)
        y = xn @ np.asarray(p["w1"], np.float64).T + np.asarray(p["b1"], np.float64)
        if "w2" in p:
            y = np.maximum(y, 0.0)
            y = y @ np.asarray(p["w2"], np.float64).T + np.asarray(p["b2"], np.float64)
        return scale * y

    # --- 1) MLP, n_outputs=1: multi-tile lane-dense path with a ragged last tile
    B = 300                                   # not a multiple of 128 -> padding path
    x = snap_bf16(jax.random.normal(kx, (B, n_features), jnp.float32))
    p = {k: snap_bf16(v) for k, v in init_params(kp, n_features, hidden_size, 1).items()}
    out = jax.block_until_ready(
        fitness_energy_model_forward(x, p, output_scaling, max_batch_tile=128))
    assert out.shape == (B, 1)
    np.testing.assert_allclose(np.asarray(out, np.float64), ref_forward(x, p, output_scaling),
                               rtol=1e-4, atol=1e-4)

    # --- 2) MLP, single full-array tile (generic (TB,O) layout). fc2 runs on the
    # MXU where f32 activations may be rounded to bf16 passes -> looser tolerance.
    B2 = 64
    x2 = snap_bf16(jax.random.normal(kx, (B2, n_features), jnp.float32))
    out2 = jax.block_until_ready(fitness_energy_model_forward(x2, p, output_scaling))
    assert out2.shape == (B2, 1)
    np.testing.assert_allclose(np.asarray(out2, np.float64), ref_forward(x2, p, output_scaling),
                               rtol=5e-2, atol=5e-2)

    # --- 3) hidden_size=None (single Linear), n_outputs=1: tiled lane-dense path
    p_lin = {k: snap_bf16(v) for k, v in init_params(kp, n_features, None, 1).items()}
    out3 = jax.block_until_ready(
        fitness_energy_model_forward(x, p_lin, output_scaling, max_batch_tile=128))
    assert out3.shape == (B, 1)
    np.testing.assert_allclose(np.asarray(out3, np.float64), ref_forward(x, p_lin, output_scaling),
                               rtol=1e-4, atol=1e-4)

    # --- 4) hidden_size=None, n_outputs=3: generic multi-output path
    p_lin3 = {k: snap_bf16(v) for k, v in init_params(kp, n_features, None, 3).items()}
    out4 = jax.block_until_ready(fitness_energy_model_forward(x2, p_lin3, output_scaling))
    assert out4.shape == (B2, 3)
    np.testing.assert_allclose(np.asarray(out4, np.float64), ref_forward(x2, p_lin3, output_scaling),
                               rtol=1e-4, atol=1e-4)

    print("KERNEL_OK")
</pallas_src>

<mosaic_0001>
module attributes {stable_mosaic.version = 11 : i64} {
  func.func @_mlp_lane_kernel(%arg0: i32, %arg1: memref<128x16xf32, #tpu.memory_space<vmem>>, %arg2: memref<16x32xf32, #tpu.memory_space<vmem>>, %arg3: memref<1x32xf32, #tpu.memory_space<vmem>>, %arg4: memref<1x32xf32, #tpu.memory_space<vmem>>, %arg5: memref<1x1xf32, #tpu.memory_space<vmem>>, %arg6: memref<1x1x128xf32, #tpu.memory_space<vmem>>) attributes {dimension_semantics = [#tpu.dimension_semantics<parallel>], iteration_bounds = array<i64: 3>, scalar_prefetch = 0 : i64, scratch_operands = 0 : i64, tpu.core_type = #tpu.core_type<tc>, window_params = [{transform_indices = @transform_0, window_bounds = array<i64: 128, 16>}, {pipeline_mode = #tpu.pipeline_mode<synchronous>, transform_indices = @transform_1, window_bounds = array<i64: 16, 32>}, {pipeline_mode = #tpu.pipeline_mode<synchronous>, transform_indices = @transform_2, window_bounds = array<i64: 1, 32>}, {pipeline_mode = #tpu.pipeline_mode<synchronous>, transform_indices = @transform_3, window_bounds = array<i64: 1, 32>}, {pipeline_mode = #tpu.pipeline_mode<synchronous>, transform_indices = @transform_4, window_bounds = array<i64: 1, 1>}, {transform_indices = @transform_5, window_bounds = array<i64: 1, 1, 128>}]} {
    %c0 = arith.constant 0 : index
    %c0_0 = arith.constant 0 : index
    %0 = vector.load %arg1[%c0, %c0_0] : memref<128x16xf32, #tpu.memory_space<vmem>>, vector<128x16xf32>
    %c0_1 = arith.constant 0 : index
    %c0_2 = arith.constant 0 : index
    %1 = vector.load %arg2[%c0_1, %c0_2] : memref<16x32xf32, #tpu.memory_space<vmem>>, vector<16x32xf32>
    %cst = arith.constant dense<0.000000e+00> : vector<128x32xf32>
    %2 = tpu.matmul %0, %1, %cst {dimension_numbers = #tpu.dot_dimension_numbers<[1], [0], [0], [1], [0, 0, 1, 1], [], []>} : vector<128x16xf32>, vector<16x32xf32>, vector<128x32xf32> -> vector<128x32xf32>
    %c0_3 = arith.constant 0 : index
    %c0_4 = arith.constant 0 : index
    %3 = vector.load %arg3[%c0_3, %c0_4] : memref<1x32xf32, #tpu.memory_space<vmem>>, vector<1x32xf32>
    %4 = vector.broadcast %3 : vector<1x32xf32> to vector<128x32xf32>
    %5 = arith.addf %2, %4 : vector<128x32xf32>
    %cst_5 = arith.constant 0.000000e+00 : f32
    %6 = vector.broadcast %cst_5 : f32 to vector<128x32xf32>
    %7 = arith.maximumf %5, %6 : vector<128x32xf32>
    %c0_6 = arith.constant 0 : index
    %c0_7 = arith.constant 0 : index
    %8 = vector.load %arg4[%c0_6, %c0_7] : memref<1x32xf32, #tpu.memory_space<vmem>>, vector<1x32xf32>
    %9 = vector.broadcast %8 : vector<1x32xf32> to vector<128x32xf32>
    %10 = arith.mulf %7, %9 : vector<128x32xf32>
    %cst_8 = arith.constant dense<0.000000e+00> : vector<128xf32>
    %11 = vector.multi_reduction <add>, %10, %cst_8 [1] : vector<128x32xf32> to vector<128xf32>
    %12 = vector.shape_cast %11 : vector<128xf32> to vector<128x1xf32>
    %13 = tpu.transpose %12, [1, 0] : vector<128x1xf32> -> vector<1x128xf32>
    %c0_9 = arith.constant 0 : index
    %c0_10 = arith.constant 0 : index
    %14 = vector.load %arg5[%c0_9, %c0_10] : memref<1x1xf32, #tpu.memory_space<vmem>>, vector<1x1xf32>
    %15 = vector.broadcast %14 : vector<1x1xf32> to vector<1x128xf32>
    %16 = arith.addf %13, %15 : vector<1x128xf32>
    %cst_11 = arith.constant 2.500000e+00 : f32
    %17 = vector.broadcast %cst_11 : f32 to vector<1x128xf32>
    %18 = arith.mulf %17, %16 : vector<1x128xf32>
    %c0_12 = arith.constant 0 : index
    %c0_13 = arith.constant 0 : index
    %c0_14 = arith.constant 0 : index
    %19 = vector.load %arg6[%c0_12, %c0_13, %c0_14] : memref<1x1x128xf32, #tpu.memory_space<vmem>>, vector<1x1x128xf32>
    %20 = vector.shape_cast %19 : vector<1x1x128xf32> to vector<1x128xf32>
    %21 = vector.shape_cast %18 : vector<1x128xf32> to vector<1x1x128xf32>
    tpu.vector_store %arg6[%c0_12, %c0_13, %c0_14], %21 {strides = array<i32>} : memref<1x1x128xf32, #tpu.memory_space<vmem>>, vector<1x1x128xf32>,
    return
  }
  func.func @transform_0(%arg0: i32) -> (i32, i32) {
    %c0_i32 = arith.constant 0 : i32
    %c0_i32_0 = arith.constant 0 : i32
    return %arg0, %c0_i32 : i32, i32
  }
  func.func @transform_1(%arg0: i32) -> (i32, i32) {
    %c0_i32 = arith.constant 0 : i32
    %c0_i32_0 = arith.constant 0 : i32
    %c0_i32_1 = arith.constant 0 : i32
    return %c0_i32, %c0_i32_0 : i32, i32
  }
  func.func @transform_2(%arg0: i32) -> (i32, i32) {
    %c0_i32 = arith.constant 0 : i32
    %c0_i32_0 = arith.constant 0 : i32
    %c0_i32_1 = arith.constant 0 : i32
    return %c0_i32, %c0_i32_0 : i32, i32
  }
  func.func @transform_3(%arg0: i32) -> (i32, i32) {
    %c0_i32 = arith.constant 0 : i32
    %c0_i32_0 = arith.constant 0 : i32
    %c0_i32_1 = arith.constant 0 : i32
    return %c0_i32, %c0_i32_0 : i32, i32
  }
  func.func @transform_4(%arg0: i32) -> (i32, i32) {
    %c0_i32 = arith.constant 0 : i32
    %c0_i32_0 = arith.constant 0 : i32
    %c0_i32_1 = arith.constant 0 : i32
    return %c0_i32, %c0_i32_0 : i32, i32
  }
  func.func @transform_5(%arg0: i32) -> (i32, i32, i32) {
    %c0_i32 = arith.constant 0 : i32
    %c0_i32_0 = arith.constant 0 : i32
    %c0_i32_1 = arith.constant 0 : i32
    return %arg0, %c0_i32, %c0_i32_0 : i32, i32, i32
  }
}

module attributes {stable_mosaic.version = 11 : i64} {
  func.func @_mlp_kernel(%arg0: i32, %arg1: memref<128x16xf32, #tpu.memory_space<vmem>>, %arg2: memref<16x32xf32, #tpu.memory_space<vmem>>, %arg3: memref<1x32xf32, #tpu.memory_space<vmem>>, %arg4: memref<32x1xf32, #tpu.memory_space<vmem>>, %arg5: memref<1x1xf32, #tpu.memory_space<vmem>>, %arg6: memref<128x1xf32, #tpu.memory_space<vmem>>) attributes {dimension_semantics = [#tpu.dimension_semantics<parallel>], iteration_bounds = array<i64: 3>, scalar_prefetch = 0 : i64, scratch_operands = 0 : i64, tpu.core_type = #tpu.core_type<tc>, window_params = [{transform_indices = @transform_0, window_bounds = array<i64: 128, 16>}, {pipeline_mode = #tpu.pipeline_mode<synchronous>, transform_indices = @transform_1, window_bounds = array<i64: 16, 32>}, {pipeline_mode = #tpu.pipeline_mode<synchronous>, transform_indices = @transform_2, window_bounds = array<i64: 1, 32>}, {pipeline_mode = #tpu.pipeline_mode<synchronous>, transform_indices = @transform_3, window_bounds = array<i64: 32, 1>}, {pipeline_mode = #tpu.pipeline_mode<synchronous>, transform_indices = @transform_4, window_bounds = array<i64: 1, 1>}, {transform_indices = @transform_5, window_bounds = array<i64: 128, 1>}]} {
    %c0 = arith.constant 0 : index
    %c0_0 = arith.constant 0 : index
    %0 = vector.load %arg1[%c0, %c0_0] : memref<128x16xf32, #tpu.memory_space<vmem>>, vector<128x16xf32>
    %c0_1 = arith.constant 0 : index
    %c0_2 = arith.constant 0 : index
    %1 = vector.load %arg2[%c0_1, %c0_2] : memref<16x32xf32, #tpu.memory_space<vmem>>, vector<16x32xf32>
    %cst = arith.constant dense<0.000000e+00> : vector<128x32xf32>
    %2 = tpu.matmul %0, %1, %cst {dimension_numbers = #tpu.dot_dimension_numbers<[1], [0], [0], [1], [0, 0, 1, 1], [], []>} : vector<128x16xf32>, vector<16x32xf32>, vector<128x32xf32> -> vector<128x32xf32>
    %c0_3 = arith.constant 0 : index
    %c0_4 = arith.constant 0 : index
    %3 = vector.load %arg3[%c0_3, %c0_4] : memref<1x32xf32, #tpu.memory_space<vmem>>, vector<1x32xf32>
    %4 = vector.broadcast %3 : vector<1x32xf32> to vector<128x32xf32>
    %5 = arith.addf %2, %4 : vector<128x32xf32>
    %cst_5 = arith.constant 0.000000e+00 : f32
    %6 = vector.broadcast %cst_5 : f32 to vector<128x32xf32>
    %7 = arith.maximumf %5, %6 : vector<128x32xf32>
    %c0_6 = arith.constant 0 : index
    %c0_7 = arith.constant 0 : index
    %8 = vector.load %arg4[%c0_6, %c0_7] : memref<32x1xf32, #tpu.memory_space<vmem>>, vector<32x1xf32>
    %cst_8 = arith.constant dense<0.000000e+00> : vector<128x1xf32>
    %9 = tpu.matmul %7, %8, %cst_8 {dimension_numbers = #tpu.dot_dimension_numbers<[1], [0], [0], [1], [0, 0, 1, 1], [], []>} : vector<128x32xf32>, vector<32x1xf32>, vector<128x1xf32> -> vector<128x1xf32>
    %c0_9 = arith.constant 0 : index
    %c0_10 = arith.constant 0 : index
    %10 = vector.load %arg5[%c0_9, %c0_10] : memref<1x1xf32, #tpu.memory_space<vmem>>, vector<1x1xf32>
    %11 = vector.broadcast %10 : vector<1x1xf32> to vector<128x1xf32>
    %12 = arith.addf %9, %11 : vector<128x1xf32>
    %cst_11 = arith.constant 2.500000e+00 : f32
    %13 = vector.broadcast %cst_11 : f32 to vector<128x1xf32>
    %14 = arith.mulf %13, %12 : vector<128x1xf32>
    %c0_12 = arith.constant 0 : index
    %c0_13 = arith.constant 0 : index
    %15 = vector.load %arg6[%c0_12, %c0_13] : memref<128x1xf32, #tpu.memory_space<vmem>>, vector<128x1xf32>
    tpu.vector_store %arg6[%c0_12, %c0_13], %14 {strides = array<i32>} : memref<128x1xf32, #tpu.memory_space<vmem>>, vector<128x1xf32>,
    return
  }
  func.func @transform_0(%arg0: i32) -> (i32, i32) {
    %c0_i32 = arith.constant 0 : i32
    %c0_i32_0 = arith.constant 0 : i32
    return %arg0, %c0_i32 : i32, i32
  }
  func.func @transform_1(%arg0: i32) -> (i32, i32) {
    %c0_i32 = arith.constant 0 : i32
    %c0_i32_0 = arith.constant 0 : i32
    %c0_i32_1 = arith.constant 0 : i32
    return %c0_i32, %c0_i32_0 : i32, i32
  }
  func.func @transform_2(%arg0: i32) -> (i32, i32) {
    %c0_i32 = arith.constant 0 : i32
    %c0_i32_0 = arith.constant 0 : i32
    %c0_i32_1 = arith.constant 0 : i32
    return %c0_i32, %c0_i32_0 : i32, i32
  }
  func.func @transform_3(%arg0: i32) -> (i32, i32) {
    %c0_i32 = arith.constant 0 : i32
    %c0_i32_0 = arith.constant 0 : i32
    %c0_i32_1 = arith.constant 0 : i32
    return %c0_i32, %c0_i32_0 : i32, i32
  }
  func.func @transform_4(%arg0: i32) -> (i32, i32) {
    %c0_i32 = arith.constant 0 : i32
    %c0_i32_0 = arith.constant 0 : i32
    %c0_i32_1 = arith.constant 0 : i32
    return %c0_i32, %c0_i32_0 : i32, i32
  }
  func.func @transform_5(%arg0: i32) -> (i32, i32) {
    %c0_i32 = arith.constant 0 : i32
    %c0_i32_0 = arith.constant 0 : i32
    return %arg0, %c0_i32 : i32, i32
  }
}

</mosaic_0001>

<bundles_post_ra>
// kernel: tpu_custom_call.1
= control target key start
LH: loop header
LB: loop body
LE: loop exit
PB: predicated region body
PF: predicated region fallthrough
CT: control target
= control target key end

     0   :  { %s1047_s0 = inlined_call_operand.vmem [shape: f32[384,16], index: 0, kind: input, shape index: {}]   ;;  %s1048_s1 = inlined_call_operand.vmem [shape: f32[16,32], index: 1, kind: input, shape index: {}]   ;;  %s1049_s2 = inlined_call_operand.vmem [shape: f32[1,32], index: 2, kind: input, shape index: {}]   ;;  %s1050_s3 = inlined_call_operand.vmem [shape: f32[1,32], index: 3, kind: input, shape index: {}]   ;;  %s1051_s4 = inlined_call_operand.<no memory space> [shape: f32[1,1], index: 4, kind: input, shape index: {}]   ;;  %s1052_s5 = inlined_call_operand.hbm [shape: f32[3,1,128], index: 5, kind: output, shape index: {}]  }
   0x1   :  { %v10_v0 = vstv %s1051_s4 }
   0x2   :  { %11 = vst [vmem:[#allocation2] sm:$0x1] %v10_v0 }
   0x3   :  { %12 = vsyncpa [#allocation4], 0 }
   0x4   :  { %14 = vsyncpa [#allocation4 + $0x1], 0  ;;  %s866_s20 = smov 0   ;;  %s868_s21 = smov 0  }
   0x5   :  { %s870_s22 = smov 0   ;;  %s872_s23 = smov 0  }
   0x6 LB: > { %s645_s4 = sadd.s32 4294967295, %s829_s23   ;;  %s646_s24 = sadd.s32 4294967294, %s829_s23   ;;  %s829_s23 = sphi %s872_s23, %s1058_s23   ;;  %s825_s22 = sphi %s870_s22, %s1057_s22   ;;  %s821_s21 = sphi %s868_s21, %s1056_s21   ;;  %s817_s20 = sphi %s866_s20, %s1055_s20  }
   0x7   : > { %s889_s25 = sadd.s32 1, %s829_s23   ;;  %s137_s26 = sadd.s32 1, %s825_s22 }
   0x8   : > { %s134_s27 = ssub.s32 %s829_s23, %s889_s25  ;;  %p147_p0 = scmp.ne.s32.totalorder %s825_s22, %s821_s21 }
   0x9   : > { %p135_p1 = scmp.eq.s32.totalorder %s134_s27, 0  ;;  %p148_p2 = scmp.eq.s32.totalorder %s645_s4, 2 }
   0xa   : > { %p153_p3 = scmp.ne.s32.totalorder %s821_s21, %s817_s20  ;;  %p154_p4 = scmp.eq.s32.totalorder %s646_s24, 2 }
   0xb   : > { %s899_s28 = scalar_select %p135_p1, %s825_s22, %s137_s26  }
   0xc   : > { %p901_p5 = por %p148_p2, %p147_p0  ;;  %p905_p6 = por %p154_p4, %p153_p3 }
   0xd   : > { %p649_p7 = scmp.ge.s32.totalorder %s829_s23, 1  ;;  %p193_p8 = scmp.lt.s32.totalorder %s829_s23, 4 }
   0xf   : > { %p194_p9 = pnand %p649_p7, %p193_p8 }
  0x10   : > { %v242_v1 = vld [vmem:[%s1048_s1] sm:$0xff] (!%p194_p9)  ;;  %v243_v2 = vld [vmem:[%s1048_s1 + $0x8] sm:$0xff] (!%p194_p9)  ;;  %s917_s10 = sshll.u32 (!%p194_p9), %s645_s4, 4  ;;  %vm251_vm0 = vcmask (!%p194_p9), 130048   ;;  %vm484_vm1 = vcmask (!%p194_p9), 261120   ;;  %s218_s4 = sand.u32 (!%p194_p9), 1, %s821_s21  }
  0x11   : > { %197 = sbr.rel (%p194_p9) target bundleno = 542 (0x21e), region = 40  ;;  %v719_v3 = vpack.c.bf16 (!%p194_p9), %v243_v2, %v242_v1  ;;  %p221_p10 = scmp.lt.s32.totalorder (!%p194_p9), %s917_s10, 47  ;;  %v943_v20 = vld [vmem:[%s1049_s2] ss:$0 sm:$0xff] (!%p194_p9) }
  0x12   : > { %v950_v26 = vld [vmem:[%s1050_s3] ss:$0 sm:$0xff] (!%p194_p9)  ;;  %s219_s24 = scalar_lea.vmem (!%p194_p9), [#allocation3], %s218_s4  ;;  %s1005_s7 = scalar_lea.hbm (!%p194_p9), %s1052_s5, %s917_s10 }
  0x13   : > { %720 = vmatprep.subr.bf16.mxu0 (!%p194_p9), %v719_v3  ;;  %723 = vmatprep.subr.bf16.mxu1 (!%p194_p9), %v719_v3  ;;  %s591_s26 = sshll.u32 (!%p194_p9), %s219_s24, 4  ;;  %s579_s8 = scalar_lea.sflag (!%p194_p9), [#allocation4], %s218_s4  ;;  %s1007_s26 = int_to_ptr.vmem [resolvable:$true] %s591_s26 }
  0x14   : > { %722 = vmatpush3.bf16.msra.mxu0 (!%p194_p9), %v719_v3  ;;  %724 = vmatpush3.bf16.msra.mxu1 (!%p194_p9), %v719_v3  ;;  %s767_s9 = scalar_lea.vmem (!%p194_p9), %s1007_s26, 16 }
  0x15   : > { %p768_p11 = scmp.ne.s32.totalorder (!%p194_p9), %s1007_s26, %s767_s9 }
  0x17   : > { %p769_p12 = pnand (!%p194_p9), %p768_p11, %p901_p5 }
  0x18   : > { %s222_s11 = scalar_select %p221_p10, %s917_s10, 47 }
  0x19   : > { %p770_p13 = pneg %p769_p12 }
  0x1a   : > { %s651_s12 = sshll.u32 %s222_s11, 3  ;;  %s832_s11 = smov [#allocation3]  }
  0x1b   : > { %s224_s15 = scalar_lea.vmem %s1047_s0, %s651_s12  ;;  %s771_s12 = sshll.u32 %s832_s11, 4  ;;  %s772_s12 = int_to_ptr.vmem [resolvable:$false] %s771_s12 }
  0x1c   : > { %v226_v4 = vld [vmem:[%s224_s15] sm:$0xff]  ;;  %v227_v5 = vld [vmem:[%s224_s15 + $0x8] sm:$0xff]  ;;  %v228_v6 = vld [vmem:[%s224_s15 + $0x10] sm:$0xff]  ;;  %s773_s13 = scalar_lea.vmem %s772_s12, 32  ;;  %p774_p0 = scmp.lt.s32.totalorder %s1007_s26, %s772_s12 }
  0x1d   : > { %695 = vmatprep.mubr.msk.f32.mxu0 %vm251_vm0, %v226_v4  ;;  %v234_v7 = vld [vmem:[%s224_s15 + $0x40] sm:$0xff]  ;;  %v235_v8 = vld [vmem:[%s224_s15 + $0x48] sm:$0xff]  ;;  %v229_v9 = vld [vmem:[%s224_s15 + $0x18] sm:$0xff]  ;;  %p775_p1 = scmp.lt.s32.totalorder %s773_s13, %s767_s9 }
  0x1e   : > { %696 = vmatmul.mubr.msk.f32.vlgmr.msra.gmra.mrb[0].mxu0 %vm251_vm0, %v227_v5  ;;  %707 = vmatprep.mubr.msk.f32.mxu1 %vm251_vm0, %v234_v7  ;;  %v236_v10 = vld [vmem:[%s224_s15 + $0x50] sm:$0xff]  ;;  %v230_v11 = vld [vmem:[%s224_s15 + $0x20] sm:$0xff]  ;;  %v237_v12 = vld [vmem:[%s224_s15 + $0x58] sm:$0xff] }
  0x1f   : > { %698 = vmatprep.mubr.msk.f32.mxu0 %vm251_vm0, %v228_v6  ;;  %708 = vmatmul.mubr.msk.f32.vlgmr.msra.gmra.mrb[0].mxu1 %vm251_vm0, %v235_v8  ;;  %v238_v13 = vld [vmem:[%s224_s15 + $0x60] sm:$0xff]  ;;  %v231_v14 = vld [vmem:[%s224_s15 + $0x28] sm:$0xff]  ;;  %v232_v15 = vld [vmem:[%s224_s15 + $0x30] sm:$0xff]  ;;  %p776_p2 = por %p775_p1, %p774_p0 }
  0x20   : > { %710 = vmatprep.mubr.msk.f32.mxu1 %vm251_vm0, %v236_v10  ;;  %v239_v16 = vld [vmem:[%s224_s15 + $0x68] sm:$0xff]  ;;  %v240_v17 = vld [vmem:[%s224_s15 + $0x70] sm:$0xff]  ;;  %v233_v18 = vld [vmem:[%s224_s15 + $0x38] sm:$0xff] }
  0x21   : > { %v241_v19 = vld [vmem:[%s224_s15 + $0x78] sm:$0xff]  ;;  %p777_p3 = pnand %p776_p2, %p770_p13 }
  0x22   : > { %699 = vmatmul.mubr.msk.f32.gmra.mrb[2].mxu0 %vm251_vm0, %v229_v9 }
  0x23   : > { %701 = vmatprep.mubr.msk.f32.mxu0 %vm251_vm0, %v230_v11  ;;  %711 = vmatmul.mubr.msk.f32.gmra.mrb[2].mxu1 %vm251_vm0, %v237_v12 }
  0x24   : > { %713 = vmatprep.mubr.msk.f32.mxu1 %vm251_vm0, %v238_v13 }
  0x26   : > { %702 = vmatmul.mubr.msk.f32.gmra.mrb[4].mxu0 %vm251_vm0, %v231_v14 }
  0x27   : > { %704 = vmatprep.mubr.msk.f32.mxu0 %vm251_vm0, %v232_v15  ;;  %714 = vmatmul.mubr.msk.f32.gmra.mrb[4].mxu1 %vm251_vm0, %v239_v16 }
  0x28   : > { %716 = vmatprep.mubr.msk.f32.mxu1 %vm251_vm0, %v240_v17 }
  0x2a   : > { %705 = vmatmul.mubr.msk.f32.gmra.mrb[6].mxu0 %vm251_vm0, %v233_v18 }
  0x2b   : > { %717 = vmatmul.mubr.msk.f32.gmra.mrb[6].mxu1 %vm251_vm0, %v241_v19  ;;  %v831_v19 = vmov 0  }
  0x2c   : > { %765 = vset.pattern.permute.xlu1 %v831_v19 }
  0xf1   : > { %v697_v21 = vpop.f32.mrb[0].mxu0 }
  0xf2   : > { %v372_v22 = vadd.f32 %v697_v21, %v943_v20  ;;  %v366_v23 = vpop.f32.mrb[1].mxu0  ;;  %v709_v24 = vpop.f32.mrb[0].mxu1 }
  0xf3   : > { %v367_v25 = vadd.f32 %v943_v20, %v366_v23  ;;  %v406_v27 = vpop.f32.mrb[1].mxu1  ;;  %v412_v5 = vadd.f32 %v709_v24, %v943_v20 }
  0xf4   : > { %v446_v28 = vmax.f32 %v372_v22, 0.0  ;;  %v407_v29 = vadd.f32 %v943_v20, %v406_v27 }
  0xf5   : > { %v445_v30 = vmax.f32 %v367_v25, 0.0  ;;  %v700_v31 = vpop.f32.mrb[2].mxu0  ;;  %v454_v12 = vmax.f32 %v412_v5, 0.0 }
  0xf6   : > { %v382_v32 = vadd.f32 %v700_v31, %v943_v20  ;;  %v376_v33 = vpop.f32.mrb[3].mxu0  ;;  %v469_v34 = vmul.f32 %v950_v26, %v446_v28  ;;  %v453_v35 = vmax.f32 %v407_v29, 0.0  ;;  %v712_v36 = vpop.f32.mrb[2].mxu1 }
  0xf7   : > { %v377_v37 = vadd.f32 %v943_v20, %v376_v33  ;;  %v416_v38 = vpop.f32.mrb[3].mxu1  ;;  %v468_v41 = vmul.f32 %v950_v26, %v445_v30  ;;  %v422_v13 = vadd.f32 %v712_v36, %v943_v20  ;;  %v477_v23 = vmul.f32 %v950_v26, %v454_v12 }
  0xf8   : > { %v448_v39 = vmax.f32 %v382_v32, 0.0  ;;  %v488_v40 = vsel %vm484_vm1, %v469_v34, 0.0  ;;  %v417_v44 = vadd.f32 %v943_v20, %v416_v38  ;;  %v476_v47 = vmul.f32 %v950_v26, %v453_v35 }
  0xf9   : > { %v447_v42 = vmax.f32 %v377_v37, 0.0  ;;  %489 = vadd.xlane.f32.xlu0 %v488_v40  ;;  %v703_v43 = vpop.f32.mrb[4].mxu0  ;;  %v485_v53 = vsel %vm484_vm1, %v468_v41, 0.0  ;;  %v456_v21 = vmax.f32 %v422_v13, 0.0  ;;  %v512_v30 = vsel %vm484_vm1, %v477_v23, 0.0 }
  0xfa   : > { %v392_v45 = vadd.f32 %v703_v43, %v943_v20  ;;  %v386_v46 = vpop.f32.mrb[5].mxu0  ;;  %v715_v48 = vpop.f32.mrb[4].mxu1  ;;  %v471_v51 = vmul.f32 %v950_v26, %v448_v39  ;;  %v455_v58 = vmax.f32 %v417_v44, 0.0  ;;  %v509_v60 = vsel %vm484_vm1, %v476_v47, 0.0  ;;  %v565_v40 = vld [vmem:[#allocation2] sm:$0x1] }
  0xfb   : > { %v470_v49 = vmul.f32 %v950_v26, %v447_v42  ;;  %v387_v50 = vadd.f32 %v943_v20, %v386_v46  ;;  %v426_v52 = vpop.f32.mrb[5].mxu1  ;;  %v432_v22 = vadd.f32 %v715_v48, %v943_v20  ;;  %v479_v31 = vmul.f32 %v950_v26, %v456_v21 }
  0xfc   : > { %v450_v54 = vmax.f32 %v392_v45, 0.0  ;;  %v427_v61 = vadd.f32 %v943_v20, %v426_v52  ;;  %v494_v0 = vsel %vm484_vm1, %v471_v51, 0.0  ;;  %v478_v6 = vmul.f32 %v950_v26, %v455_v58 }
  0xfd   : > { %486 = vadd.xlane.f32.xlu0 %v485_v53  ;;  %v491_v55 = vsel %vm484_vm1, %v470_v49, 0.0  ;;  %v449_v56 = vmax.f32 %v387_v50, 0.0  ;;  %v706_v57 = vpop.f32.mrb[6].mxu0  ;;  %v458_v29 = vmax.f32 %v432_v22, 0.0  ;;  %v518_v35 = vsel %vm484_vm1, %v479_v31, 0.0 }
  0xfe   : > { %492 = vadd.xlane.f32.xlu1 %v491_v55  ;;  %v402_v59 = vadd.f32 %v706_v57, %v943_v20  ;;  %v396_v62 = vpop.f32.mrb[7].mxu0  ;;  %v718_v63 = vpop.f32.mrb[6].mxu1  ;;  %v473_v1 = vmul.f32 %v950_v26, %v450_v54  ;;  %v457_v7 = vmax.f32 %v427_v61, 0.0  ;;  %v515_v14 = vsel %vm484_vm1, %v478_v6, 0.0 }
  0xff   : > { %v472_v2 = vmul.f32 %v950_v26, %v449_v56  ;;  %v436_v3 = vpop.f32.mrb[7].mxu1  ;;  %v397_v9 = vadd.f32 %v943_v20, %v396_v62  ;;  %v442_v28 = vadd.f32 %v718_v63, %v943_v20  ;;  %v481_v36 = vmul.f32 %v950_v26, %v458_v29 }
 0x100   : > { %v452_v4 = vmax.f32 %v402_v59, 0.0  ;;  %v500_v10 = vsel %vm484_vm1, %v473_v1, 0.0  ;;  %v480_v16 = vmul.f32 %v950_v26, %v457_v7  ;;  %v437_v17 = vadd.f32 %v943_v20, %v436_v3 }
 0x101   : > { %510 = vadd.xlane.f32.xlu0 %v509_v60  ;;  %v497_v8 = vsel %vm484_vm1, %v472_v2, 0.0  ;;  %v451_v15 = vmax.f32 %v397_v9, 0.0  ;;  %v460_v34 = vmax.f32 %v442_v28, 0.0  ;;  %v524_v38 = vsel %vm484_vm1, %v481_v36, 0.0 }
 0x102   : > { %495 = vadd.xlane.f32.xlu1 %v494_v0  ;;  %v475_v11 = vmul.f32 %v950_v26, %v452_v4  ;;  %v521_v24 = vsel %vm484_vm1, %v480_v16, 0.0  ;;  %v459_v27 = vmax.f32 %v437_v17, 0.0  ;;  %v571_v56 = vlaneseq }
 0x103   : > { %v474_v25 = vmul.f32 %v950_v26, %v451_v15  ;;  %v483_v37 = vmul.f32 %v950_v26, %v460_v34 }
 0x104   : > { %v506_v18 = vsel %vm484_vm1, %v475_v11, 0.0  ;;  %v482_v33 = vmul.f32 %v950_v26, %v459_v27  ;;  %v572_v57 = vshrl.u32 %v571_v56, 7 }
 0x105   : > { %498 = vadd.xlane.f32.xlu0 %v497_v8  ;;  %v503_v32 = vsel %vm484_vm1, %v474_v25, 0.0  ;;  %v530_v39 = vsel %vm484_vm1, %v483_v37, 0.0 }
 0x106   : > { %501 = vadd.xlane.f32.xlu1 %v500_v10  ;;  %v527_v20 = vsel %vm484_vm1, %v482_v33, 0.0  ;;  %v573_v58 = vsub.s32 0, %v572_v57 }
 0x109   : > { %516 = vadd.xlane.f32.xlu0 %v515_v14 }
 0x10a   : > { %507 = vadd.xlane.f32.xlu1 %v506_v18 }
 0x10d   : > { %522 = vadd.xlane.f32.xlu0 %v521_v24 }
 0x10e   : > { %513 = vadd.xlane.f32.xlu1 %v512_v30 }
 0x111   : > { %504 = vadd.xlane.f32.xlu0 %v503_v32 }
 0x112   : > { %519 = vadd.xlane.f32.xlu1 %v518_v35 }
 0x115   : > { %528 = vadd.xlane.f32.xlu0 %v527_v20 }
 0x116   : > { %525 = vadd.xlane.f32.xlu1 %v524_v38 }
 0x11a   : > { %531 = vadd.xlane.f32.xlu1 %v530_v39 }
 0x12b   : > { %568 = vperm.xlu1 %765, %v565_v40  }
 0x186   : > { %v490_v41 = vpop.xlane.xlu0 %489 }
 0x18a   : > { %v487_v42 = vpop.xlane.xlu0 %486 }
 0x18b   : > { %533 = vxpose.xlu0.b32.start [1/16] (narrow) %v487_v42, 8  ;;  %v493_v44 = vpop.xlane.xlu1 %492 }
 0x18e   : > { %v511_v43 = vpop.xlane.xlu0 %510 }
 0x18f   : > { %534 = vxpose.xlu0.b32.cont [2/16] (narrow) %v490_v41, 8  ;;  %v496_v46 = vpop.xlane.xlu1 %495 }
 0x192   : > { %v499_v45 = vpop.xlane.xlu0 %498 }
 0x193   : > { %535 = vxpose.xlu0.b32.cont [3/16] (narrow) %v493_v44, 8  ;;  %v502_v48 = vpop.xlane.xlu1 %501 }
 0x196   : > { %v517_v47 = vpop.xlane.xlu0 %516 }
 0x197   : > { %536 = vxpose.xlu0.b32.cont [4/16] (narrow) %v496_v46, 8  ;;  %v508_v50 = vpop.xlane.xlu1 %507 }
 0x19a   : > { %v523_v26 = vpop.xlane.xlu0 %522 }
 0x19b   : > { %537 = vxpose.xlu0.b32.cont [5/16] (narrow) %v499_v45, 8  ;;  %v514_v51 = vpop.xlane.xlu1 %513 }
 0x19e   : > { %v505_v49 = vpop.xlane.xlu0 %504 }
 0x19f   : > { %538 = vxpose.xlu0.b32.cont [6/16] (narrow) %v502_v48, 8  ;;  %v520_v52 = vpop.xlane.xlu1 %519 }
 0x1a2   : > { %v529_v54 = vpop.xlane.xlu0 %528 }
 0x1a3   : > { %539 = vxpose.xlu0.b32.cont [7/16] (narrow) %v505_v49, 8  ;;  %v526_v53 = vpop.xlane.xlu1 %525 }
 0x1a7   : > { %540 = vxpose.xlu0.b32.cont [8/16] (narrow) %v508_v50, 8  ;;  %v532_v55 = vpop.xlane.xlu1 %531 }
 0x1ab   : > { %541 = vxpose.xlu0.b32.cont [9/16] (narrow) %v511_v43, 8  ;;  %v569_v59 = vpop.permute.xlu1 %568 }
 0x1ac   : > { %v574_v60 = vrot.slane %v569_v59, %v573_v58 }
 0x1af   : > { %542 = vxpose.xlu0.b32.cont [10/16] (narrow) %v514_v51, 8 }
 0x1b3   : > { %543 = vxpose.xlu0.b32.cont [11/16] (narrow) %v517_v47, 8 }
 0x1b7   : > { %544 = vxpose.xlu0.b32.cont [12/16] (narrow) %v520_v52, 8 }
 0x1bb   : > { %545 = vxpose.xlu0.b32.cont [13/16] (narrow) %v523_v26, 8 }
 0x1bf   : > { %546 = vxpose.xlu0.b32.cont [14/16] (narrow) %v526_v53, 8 }
 0x1c3   : > { %547 = vxpose.xlu0.b32.cont [15/16] (narrow) %v529_v54, 8 }
 0x1c7   : > { %548 = vxpose.xlu0.b32.end [16/16] (narrow) %v532_v55, 8 }
 0x1f0   : > { %766 = vset.pattern.permute.xlu0 %v831_v19 }
 0x20b   : > { %v549_v61 = vpop.trf.xlu0 }
 0x20c   : > { %v575_v62 = vadd.f32 %v574_v60, %v549_v61 }
 0x20e   : > { %v576_v63 = vmul.f32 2.5, %v575_v62 }
 0x210   : > { %577 = vst [vmem:[%s219_s24] sm:$0x1] %v576_v63 }
 0x211   : > { %780 = shalt.err (!%p777_p3)
}
 0x212   : > { %s781_s10 = scalar_lea.hbm %s1005_s7, 16  ;;  %s785_s16 = scalar_lea.hbm %s1052_s5, 48 }
 0x213   : > { %p782_p4 = scmp.ne.s32.totalorder %s1005_s7, %s781_s10  ;;  %p786_p9 = scmp.lt.u32.totalorder %s1005_s7, %s1052_s5 }
 0x214   : > { %p787_p10 = scmp.lt.u32.totalorder %s785_s16, %s781_s10  ;;  %p789_p12 = scmp.lt.u32.totalorder %s781_s10, %s1005_s7 }
 0x215   : > { %p783_p7 = pnand %p782_p4, %p901_p5 }
 0x216   : > { %p788_p11 = por %p787_p10, %p786_p9 }
 0x217   : > { %p784_p8 = pneg %p783_p7 }
 0x218   : > { %p790_p13 = por %p789_p12, %p788_p11 }
 0x21a   : > { %p791_p0 = pnand %p790_p13, %p784_p8 }
 0x21c   : > { %794 = shalt.err (!%p791_p0)
}
 0x21d   : > { %725 = dma.vmem_to_hbm [thread:$0]  (%p901_p5), %s1007_s26, 16, %s1005_s7, %s579_s8  }
 0x21e PF: > { %p731_p1 = scmp.ge.s32.totalorder %s829_s23, 2  ;;  %s603_s19 = sand.u32 1, %s817_s20  }
 0x21f   : > { %s604_s4 = scalar_lea.sflag [#allocation4], %s603_s19 }
 0x220   : > { %p728_p2 = pnand %p731_p1, %p905_p6 }
 0x222   : > { %812 = dma.done.wait (!%p728_p2), %s604_s4, 16  }
 0x223   : > { %814 = vsyncadd (!%p728_p2), %s604_s4, 4294967280  ;;  %p17_p3 = scmp.ge.s32.totalorder %s889_s25, 5   ;;  %s1055_s20 = smov %s821_s21 }
 0x224   : > { %s1056_s21 = smov %s825_s22  ;;  %s1057_s22 = smov %s899_s28 }
 0x225   : > { %s1058_s23 = smov %s889_s25  ;;  %19 = sbr.rel (!%p17_p3) target bundleno = 6 (0x6), region = 75 }
 0x22c   :  { %608 = vsyncpa [#allocation4], 1 }
 0x22d   :  { %610 = vsyncpa [#allocation4 + $0x1], 1 }

// kernel: tpu_custom_call.1
= control target key start
LH: loop header
LB: loop body
LE: loop exit
PB: predicated region body
PF: predicated region fallthrough
CT: control target
= control target key end

     0   :  { %s963_s20 = smov 0   ;;  %s1092_s0 = inlined_call_operand.vmem [shape: f32[384,16], index: 0, kind: input, shape index: {}]   ;;  %s1093_s1 = inlined_call_operand.vmem [shape: f32[16,32], index: 1, kind: input, shape index: {}]   ;;  %s1094_s2 = inlined_call_operand.vmem [shape: f32[1,32], index: 2, kind: input, shape index: {}]   ;;  %s1095_s3 = inlined_call_operand.vmem [shape: f32[32,1], index: 3, kind: input, shape index: {}]   ;;  %s1096_s4 = inlined_call_operand.<no memory space> [shape: f32[1,1], index: 4, kind: input, shape index: {}]   ;;  %s1097_s5 = inlined_call_operand.vmem [shape: f32[384,1], index: 5, kind: output, shape index: {}]  }
   0x1   :  { %v10_v0 = vstv %s1096_s4 }
   0x2   :  { %11 = vst [vmem:[#allocation2] sm:$0x1] %v10_v0 }
   0x3 LB: > { %s759_s21 = sadd.s32 4294967295, %s928_s20   ;;  %p763_p0 = scmp.ge.s32.totalorder %s928_s20, 1  ;;  %s928_s20 = sphi %s963_s20, %s17_s20  }
   0x4   : > { %p190_p1 = scmp.lt.s32.totalorder %s928_s20, 4 }
   0x6   : > { %p191_p2 = pnand %p763_p0, %p190_p1 }
   0x7   : > { %v246_v1 = vld [vmem:[%s1093_s1] sm:$0xff] (!%p191_p2)  ;;  %v247_v2 = vld [vmem:[%s1093_s1 + $0x8] sm:$0xff] (!%p191_p2)  ;;  %s764_s25 = sshll.u32 (!%p191_p2), %s759_s21, 4  ;;  %vm255_vm0 = vcmask (!%p191_p2), 130048   ;;  %v467_v23 = vld [vmem:[%s1095_s3 + $0x10] sm:$0xff] (!%p191_p2)  ;;  %vm476_vm1 = vcmask (!%p191_p2), 261120  }
   0x8   : > { %194 = sbr.rel (%p191_p2) target bundleno = 484 (0x1e4), region = 40  ;;  %v465_v3 = vld [vmem:[%s1095_s3] sm:$0xff] (!%p191_p2)  ;;  %v902_v4 = vpack.c.bf16 (!%p191_p2), %v247_v2, %v246_v1  ;;  %p219_p3 = scmp.lt.s32.totalorder (!%p191_p2), %s764_s25, 47  ;;  %v466_v5 = vld [vmem:[%s1095_s3 + $0x8] sm:$0xff] (!%p191_p2)  ;;  %v468_v24 = vld [vmem:[%s1095_s3 + $0x18] sm:$0xff] (!%p191_p2)  ;;  %vm686_vm2 = vcmask (!%p191_p2), 7168  }
   0x9   : > { %v906_v6 = vpack.c.bf16 (!%p191_p2), %v466_v5, %v465_v3  ;;  %v910_v25 = vpack.c.bf16 (!%p191_p2), %v468_v24, %v467_v23  ;;  %v768_v26 = vld [vmem:[%s1094_s2] ss:$0 sm:$0xff] (!%p191_p2) }
   0xa   : > { %903 = vmatprep.subr.bf16.mxu0 (!%p191_p2), %v902_v4 }
   0xb   : > { %905 = vmatpush3.bf16.msra.mxu0 (!%p191_p2), %v902_v4  ;;  %907 = vmatprep.subr.bf16.mxu1 (!%p191_p2), %v906_v6 }
   0xc   : > { %909 = vmatpush3.bf16.msra.mxu1 (!%p191_p2), %v906_v6 }
   0xd   : > { %911 = vmatprep.subr.bf16.mxu1 (!%p191_p2), %v910_v25 }
   0xf   : > { %s1099_s25 = smov (!%p219_p3, %s764_s25), 47 }
  0x10   : > { %s765_s30 = sshll.u32 %s1099_s25, 3  ;;  %913 = vmatpush3.bf16.msra.mxu1 %v910_v25 }
  0x11   : > { %s991_s8 = scalar_lea.vmem %s1092_s0, %s765_s30  ;;  %s1055_s17 = scalar_lea.vmem %s1097_s5, %s765_s30 }
  0x12   : > { %v230_v7 = vld [vmem:[%s991_s8] sm:$0xff]  ;;  %v231_v8 = vld [vmem:[%s991_s8 + $0x8] sm:$0xff]  ;;  %v232_v9 = vld [vmem:[%s991_s8 + $0x10] sm:$0xff] }
  0x13   : > { %846 = vmatprep.mubr.msk.f32.mxu0 %vm255_vm0, %v230_v7  ;;  %v233_v10 = vld [vmem:[%s991_s8 + $0x18] sm:$0xff]  ;;  %v234_v11 = vld [vmem:[%s991_s8 + $0x20] sm:$0xff]  ;;  %v235_v12 = vld [vmem:[%s991_s8 + $0x28] sm:$0xff] }
  0x14   : > { %847 = vmatmul.mubr.msk.f32.vlgmr.msra.gmra.mrb[0].mxu0 %vm255_vm0, %v231_v8  ;;  %v236_v13 = vld [vmem:[%s991_s8 + $0x30] sm:$0xff]  ;;  %v237_v14 = vld [vmem:[%s991_s8 + $0x38] sm:$0xff]  ;;  %v238_v15 = vld [vmem:[%s991_s8 + $0x40] sm:$0xff] }
  0x15   : > { %849 = vmatprep.mubr.msk.f32.mxu0 %vm255_vm0, %v232_v9  ;;  %v239_v16 = vld [vmem:[%s991_s8 + $0x48] sm:$0xff]  ;;  %v240_v17 = vld [vmem:[%s991_s8 + $0x50] sm:$0xff]  ;;  %v241_v18 = vld [vmem:[%s991_s8 + $0x58] sm:$0xff] }
  0x16   : > { %v242_v19 = vld [vmem:[%s991_s8 + $0x60] sm:$0xff]  ;;  %v243_v20 = vld [vmem:[%s991_s8 + $0x68] sm:$0xff]  ;;  %v244_v21 = vld [vmem:[%s991_s8 + $0x70] sm:$0xff] }
  0x17   : > { %v245_v22 = vld [vmem:[%s991_s8 + $0x78] sm:$0xff] }
  0x18   : > { %850 = vmatmul.mubr.msk.f32.gmra.mrb[2].mxu0 %vm255_vm0, %v233_v10 }
  0x19   : > { %852 = vmatprep.mubr.msk.f32.mxu0 %vm255_vm0, %v234_v11  ;;  %v785_v11 = vld [vmem:[#allocation2] ss:$0 sm:$0xff] }
  0x1c   : > { %853 = vmatmul.mubr.msk.f32.gmra.mrb[4].mxu0 %vm255_vm0, %v235_v12 }
  0x1d   : > { %855 = vmatprep.mubr.msk.f32.mxu0 %vm255_vm0, %v236_v13 }
  0x20   : > { %856 = vmatmul.mubr.msk.f32.gmra.mrb[6].mxu0 %vm255_vm0, %v237_v14 }
  0x21   : > { %858 = vmatprep.mubr.msk.f32.mxu0 %vm255_vm0, %v238_v15 }
  0x24   : > { %859 = vmatmul.mubr.msk.f32.gmra.mrb[8].mxu0 %vm255_vm0, %v239_v16 }
  0x25   : > { %861 = vmatprep.mubr.msk.f32.mxu0 %vm255_vm0, %v240_v17 }
  0x28   : > { %862 = vmatmul.mubr.msk.f32.gmra.mrb[10].mxu0 %vm255_vm0, %v241_v18 }
  0x29   : > { %864 = vmatprep.mubr.msk.f32.mxu0 %vm255_vm0, %v242_v19 }
  0x2c   : > { %865 = vmatmul.mubr.msk.f32.gmra.mrb[12].mxu0 %vm255_vm0, %v243_v20 }
  0x2d   : > { %867 = vmatprep.mubr.msk.f32.mxu0 %vm255_vm0, %v244_v21 }
  0x30   : > { %868 = vmatmul.mubr.msk.f32.gmra.mrb[14].mxu0 %vm255_vm0, %v245_v22 }
  0xe7   : > { %v848_v27 = vpop.f32.mrb[0].mxu0 }
  0xe8   : > { %v376_v28 = vadd.f32 %v848_v27, %v768_v26  ;;  %v370_v29 = vpop.f32.mrb[1].mxu0 }
  0xe9   : > { %v371_v30 = vadd.f32 %v768_v26, %v370_v29 }
  0xea   : > { %v450_v33 = vmax.f32 %v376_v28, 0.0 }
  0xeb   : > { %v449_v31 = vmax.f32 %v371_v30, 0.0  ;;  %v851_v32 = vpop.f32.mrb[2].mxu0 }
  0xec   : > { %v386_v34 = vadd.f32 %v851_v32, %v768_v26  ;;  %v380_v35 = vpop.f32.mrb[3].mxu0 }
  0xed   : > { %v381_v36 = vadd.f32 %v768_v26, %v380_v35  ;;  %878 = vmatprep.mubr.msk.f32.mxu1 %vm476_vm1, %v449_v31 }
  0xee   : > { %879 = vmatmul.mubr.msk.f32.vlgmr.msra.gmra.mrb[0].mxu1 %vm476_vm1, %v450_v33  ;;  %v452_v39 = vmax.f32 %v386_v34, 0.0 }
  0xef   : > { %v451_v37 = vmax.f32 %v381_v36, 0.0  ;;  %v854_v38 = vpop.f32.mrb[4].mxu0 }
  0xf0   : > { %v396_v40 = vadd.f32 %v854_v38, %v768_v26  ;;  %v390_v41 = vpop.f32.mrb[5].mxu0 }
  0xf1   : > { %v391_v42 = vadd.f32 %v768_v26, %v390_v41  ;;  %881 = vmatprep.mubr.msk.f32.mxu1 %vm476_vm1, %v451_v37 }
  0xf2   : > { %882 = vmatmul.mubr.msk.f32.gmra.mrb[2].mxu1 %vm476_vm1, %v452_v39  ;;  %v454_v45 = vmax.f32 %v396_v40, 0.0 }
  0xf3   : > { %v453_v43 = vmax.f32 %v391_v42, 0.0  ;;  %v857_v44 = vpop.f32.mrb[6].mxu0 }
  0xf4   : > { %v406_v46 = vadd.f32 %v857_v44, %v768_v26  ;;  %v400_v47 = vpop.f32.mrb[7].mxu0 }
  0xf5   : > { %v401_v48 = vadd.f32 %v768_v26, %v400_v47  ;;  %884 = vmatprep.mubr.msk.f32.mxu1 %vm476_vm1, %v453_v43 }
  0xf6   : > { %885 = vmatmul.mubr.msk.f32.gmra.mrb[4].mxu1 %vm476_vm1, %v454_v45  ;;  %v456_v51 = vmax.f32 %v406_v46, 0.0 }
  0xf7   : > { %v455_v49 = vmax.f32 %v401_v48, 0.0  ;;  %v860_v50 = vpop.f32.mrb[8].mxu0 }
  0xf8   : > { %v416_v52 = vadd.f32 %v860_v50, %v768_v26  ;;  %v410_v53 = vpop.f32.mrb[9].mxu0 }
  0xf9   : > { %v411_v54 = vadd.f32 %v768_v26, %v410_v53  ;;  %887 = vmatprep.mubr.msk.f32.mxu1 %vm476_vm1, %v455_v49 }
  0xfa   : > { %888 = vmatmul.mubr.msk.f32.gmra.mrb[6].mxu1 %vm476_vm1, %v456_v51  ;;  %v458_v57 = vmax.f32 %v416_v52, 0.0 }
  0xfb   : > { %v457_v55 = vmax.f32 %v411_v54, 0.0  ;;  %v863_v56 = vpop.f32.mrb[10].mxu0 }
  0xfc   : > { %v426_v58 = vadd.f32 %v863_v56, %v768_v26  ;;  %v420_v59 = vpop.f32.mrb[11].mxu0 }
  0xfd   : > { %v421_v60 = vadd.f32 %v768_v26, %v420_v59  ;;  %890 = vmatprep.mubr.msk.f32.mxu1 %vm476_vm1, %v457_v55 }
  0xfe   : > { %891 = vmatmul.mubr.msk.f32.gmra.mrb[8].mxu1 %vm476_vm1, %v458_v57  ;;  %v460_v63 = vmax.f32 %v426_v58, 0.0 }
  0xff   : > { %v459_v61 = vmax.f32 %v421_v60, 0.0  ;;  %v866_v62 = vpop.f32.mrb[12].mxu0 }
 0x100   : > { %v436_v0 = vadd.f32 %v866_v62, %v768_v26  ;;  %v430_v1 = vpop.f32.mrb[13].mxu0 }
 0x101   : > { %v431_v2 = vadd.f32 %v768_v26, %v430_v1  ;;  %893 = vmatprep.mubr.msk.f32.mxu1 %vm476_vm1, %v459_v61 }
 0x102   : > { %894 = vmatmul.mubr.msk.f32.gmra.mrb[10].mxu1 %vm476_vm1, %v460_v63  ;;  %v462_v5 = vmax.f32 %v436_v0, 0.0 }
 0x103   : > { %v461_v3 = vmax.f32 %v431_v2, 0.0  ;;  %v869_v4 = vpop.f32.mrb[14].mxu0 }
 0x104   : > { %v446_v6 = vadd.f32 %v869_v4, %v768_v26  ;;  %v440_v7 = vpop.f32.mrb[15].mxu0 }
 0x105   : > { %v441_v8 = vadd.f32 %v768_v26, %v440_v7  ;;  %896 = vmatprep.mubr.msk.f32.mxu1 %vm476_vm1, %v461_v3 }
 0x106   : > { %897 = vmatmul.mubr.msk.f32.gmra.mrb[12].mxu1 %vm476_vm1, %v462_v5  ;;  %v464_v10 = vmax.f32 %v446_v6, 0.0 }
 0x107   : > { %v463_v9 = vmax.f32 %v441_v8, 0.0 }
 0x109   : > { %899 = vmatprep.mubr.msk.f32.mxu1 %vm476_vm1, %v463_v9 }
 0x10a   : > { %900 = vmatmul.mubr.msk.f32.gmra.mrb[14].mxu1 %vm476_vm1, %v464_v10 }
 0x1c1   : > { %v880_v12 = vpop.f32.mrb[0].mxu1 }
 0x1c2   : > { %v597_v13 = vadd.f32 %v880_v12, %v785_v11  ;;  %v591_v14 = vpop.f32.mrb[1].mxu1 }
 0x1c3   : > { %v592_v15 = vadd.f32 %v785_v11, %v591_v14 }
 0x1c4   : > { %v671_v16 = vmul.f32 2.5, %v597_v13 }
 0x1c5   : > { %v670_v17 = vmul.f32 2.5, %v592_v15  ;;  %v883_v18 = vpop.f32.mrb[2].mxu1 }
 0x1c6   : > { %688 = vst.msk [vmem:[%s1055_s17 + $0x8] sm:$0xff] %vm686_vm2, %v671_v16  ;;  %v607_v19 = vadd.f32 %v883_v18, %v785_v11  ;;  %v601_v20 = vpop.f32.mrb[3].mxu1 }
 0x1c7   : > { %687 = vst.msk [vmem:[%s1055_s17] sm:$0xff] %vm686_vm2, %v670_v17  ;;  %v602_v21 = vadd.f32 %v785_v11, %v601_v20 }
 0x1c8   : > { %v673_v22 = vmul.f32 2.5, %v607_v19 }
 0x1c9   : > { %v672_v23 = vmul.f32 2.5, %v602_v21  ;;  %v886_v24 = vpop.f32.mrb[4].mxu1 }
 0x1ca   : > { %690 = vst.msk [vmem:[%s1055_s17 + $0x18] sm:$0xff] %vm686_vm2, %v673_v22  ;;  %v617_v25 = vadd.f32 %v886_v24, %v785_v11  ;;  %v611_v26 = vpop.f32.mrb[5].mxu1 }
 0x1cb   : > { %689 = vst.msk [vmem:[%s1055_s17 + $0x10] sm:$0xff] %vm686_vm2, %v672_v23  ;;  %v612_v27 = vadd.f32 %v785_v11, %v611_v26 }
 0x1cc   : > { %v675_v28 = vmul.f32 2.5, %v617_v25 }
 0x1cd   : > { %v674_v29 = vmul.f32 2.5, %v612_v27  ;;  %v889_v30 = vpop.f32.mrb[6].mxu1 }
 0x1ce   : > { %692 = vst.msk [vmem:[%s1055_s17 + $0x28] sm:$0xff] %vm686_vm2, %v675_v28  ;;  %v627_v31 = vadd.f32 %v889_v30, %v785_v11  ;;  %v621_v32 = vpop.f32.mrb[7].mxu1 }
 0x1cf   : > { %691 = vst.msk [vmem:[%s1055_s17 + $0x20] sm:$0xff] %vm686_vm2, %v674_v29  ;;  %v622_v33 = vadd.f32 %v785_v11, %v621_v32 }
 0x1d0   : > { %v677_v34 = vmul.f32 2.5, %v627_v31 }
 0x1d1   : > { %v676_v35 = vmul.f32 2.5, %v622_v33  ;;  %v892_v36 = vpop.f32.mrb[8].mxu1 }
 0x1d2   : > { %694 = vst.msk [vmem:[%s1055_s17 + $0x38] sm:$0xff] %vm686_vm2, %v677_v34  ;;  %v637_v37 = vadd.f32 %v892_v36, %v785_v11  ;;  %v631_v38 = vpop.f32.mrb[9].mxu1 }
 0x1d3   : > { %693 = vst.msk [vmem:[%s1055_s17 + $0x30] sm:$0xff] %vm686_vm2, %v676_v35  ;;  %v632_v39 = vadd.f32 %v785_v11, %v631_v38 }
 0x1d4   : > { %v679_v40 = vmul.f32 2.5, %v637_v37 }
 0x1d5   : > { %v678_v41 = vmul.f32 2.5, %v632_v39  ;;  %v895_v42 = vpop.f32.mrb[10].mxu1 }
 0x1d6   : > { %696 = vst.msk [vmem:[%s1055_s17 + $0x48] sm:$0xff] %vm686_vm2, %v679_v40  ;;  %v647_v43 = vadd.f32 %v895_v42, %v785_v11  ;;  %v641_v44 = vpop.f32.mrb[11].mxu1 }
 0x1d7   : > { %695 = vst.msk [vmem:[%s1055_s17 + $0x40] sm:$0xff] %vm686_vm2, %v678_v41  ;;  %v642_v45 = vadd.f32 %v785_v11, %v641_v44 }
 0x1d8   : > { %v681_v46 = vmul.f32 2.5, %v647_v43 }
 0x1d9   : > { %v680_v47 = vmul.f32 2.5, %v642_v45  ;;  %v898_v48 = vpop.f32.mrb[12].mxu1 }
 0x1da   : > { %698 = vst.msk [vmem:[%s1055_s17 + $0x58] sm:$0xff] %vm686_vm2, %v681_v46  ;;  %v657_v49 = vadd.f32 %v898_v48, %v785_v11  ;;  %v651_v50 = vpop.f32.mrb[13].mxu1 }
 0x1db   : > { %697 = vst.msk [vmem:[%s1055_s17 + $0x50] sm:$0xff] %vm686_vm2, %v680_v47  ;;  %v652_v51 = vadd.f32 %v785_v11, %v651_v50 }
 0x1dc   : > { %v683_v52 = vmul.f32 2.5, %v657_v49 }
 0x1dd   : > { %v682_v53 = vmul.f32 2.5, %v652_v51  ;;  %v901_v54 = vpop.f32.mrb[14].mxu1 }
 0x1de   : > { %700 = vst.msk [vmem:[%s1055_s17 + $0x68] sm:$0xff] %vm686_vm2, %v683_v52  ;;  %v667_v55 = vadd.f32 %v901_v54, %v785_v11  ;;  %v661_v56 = vpop.f32.mrb[15].mxu1 }
 0x1df   : > { %699 = vst.msk [vmem:[%s1055_s17 + $0x60] sm:$0xff] %vm686_vm2, %v682_v53  ;;  %v662_v57 = vadd.f32 %v785_v11, %v661_v56 }
 0x1e0   : > { %v685_v58 = vmul.f32 2.5, %v667_v55 }
 0x1e1   : > { %v684_v59 = vmul.f32 2.5, %v662_v57 }
 0x1e2   : > { %702 = vst.msk [vmem:[%s1055_s17 + $0x78] sm:$0xff] %vm686_vm2, %v685_v58 }
 0x1e3   : > { %701 = vst.msk [vmem:[%s1055_s17 + $0x70] sm:$0xff] %vm686_vm2, %v684_v59 }
 0x1e4 PF: > { %s17_s20 = sadd.s32 1, %s928_s20  }
 0x1e5   : > { %p14_p4 = scmp.ge.s32.totalorder %s17_s20, 5  }
 0x1e7   :  { %16 = sbr.rel (!%p14_p4) target bundleno = 3 (0x3), region = 70 }

</bundles_post_ra>
